<compile_context>
chip_gen: v5e
topology: v5e:2x2
jax: 0.10.0
libtpu: 0.0.40
codegen_flags: <defaults>
</compile_context>

<pallas_src>
import functools

import jax
import jax.numpy as jnp
import numpy as np
from jax.experimental import pallas as pl
from jax.experimental.pallas import tpu as pltpu


def _mha_kernel(x_ref, wqkv_ref, bqkv_ref, wproj_ref, bproj_ref, o_ref, *,
                batch_tile, seq, dim, num_heads, head_dim):
    Bt, N, C, H, Dh = batch_tile, seq, dim, num_heads, head_dim

    x = x_ref[...]                                             # (Bt*N, C) bf16

    # --- Fused QKV projection over all rows of the batch tile (MXU) --------
    # wqkv_ref: (C, 3C) bf16, pre-transposed, Q columns pre-scaled.
    # bqkv_ref: (1, 3C) f32, Q part pre-scaled.
    qkv = jnp.dot(x, wqkv_ref[...],
                  preferred_element_type=jnp.float32) + bqkv_ref[...]   # (Bt*N, 3C) f32

    # --- Gather per-(batch, head) Q/K/V tiles into a head-major stack -------
    def gather(col0):
        parts = []
        for b in range(Bt):                                    # static unroll
            r0, r1 = b * N, (b + 1) * N
            for h in range(H):
                c0 = col0 + h * Dh
                parts.append(qkv[r0:r1, c0:c0 + Dh])           # (N, Dh)
        return jnp.stack(parts, axis=0).astype(jnp.bfloat16)   # (Bt*H, N, Dh)

    q3 = gather(0 * C)
    k3 = gather(1 * C)
    v3 = gather(2 * C)

    # --- Batched scaled-dot-product attention (scale already folded in Q) ---
    logits = jnp.einsum('hnd,hmd->hnm', q3, k3,
                        preferred_element_type=jnp.float32)    # (Bt*H, N, N) f32
    logits = logits - jnp.max(logits, axis=-1, keepdims=True)
    p = jnp.exp(logits)
    denom = jnp.sum(p, axis=-1, keepdims=True)                 # (Bt*H, N, 1)
    p = p * pl.reciprocal(denom, approx=True)                  # softmax probs (f32)

    ctx3 = jnp.einsum('hnm,hmd->hnd', p.astype(jnp.bfloat16), v3,
                      preferred_element_type=jnp.float32)      # (Bt*H, N, Dh) f32

    # --- Re-pack context back to (Bt*N, C) ----------------------------------
    ctx_rows = []
    for b in range(Bt):
        ctx_rows.append(jnp.concatenate(
            [ctx3[b * H + h] for h in range(H)], axis=-1))     # (N, C)
    ctx = jnp.concatenate(ctx_rows, axis=0).astype(jnp.bfloat16)   # (Bt*N, C)

    # --- Output projection ---------------------------------------------------
    out = jnp.dot(ctx, wproj_ref[...],
                  preferred_element_type=jnp.float32) + bproj_ref[...]   # (Bt*N, C) f32

    # NOTE(synk): C < 128 lanes so this store is a masked vst; a lane-dense
    # (Bt, N*C) output slab would need an in-kernel minor-dim relayout, which
    # is riskier to lower than the few bytes here are worth.
    o_ref[...] = out.astype(o_ref.dtype)


def multi_head_attention(x, w_qkv, b_qkv, w_proj, b_proj, *, num_heads):
    """x: (B, N, C).  w_qkv: (3C, C), b_qkv: (3C,), w_proj: (C, C), b_proj: (C,)."""
    B, N, C = x.shape
    assert C % num_heads == 0
    head_dim = C // num_heads
    scale = head_dim ** (-0.5) + 1e-8          # matches the PyTorch module exactly

    # ---- wrapper-side layout plumbing (XLA, not the hot path) --------------
    # PyTorch nn.Linear stores (out_features, in_features); pre-transpose so the
    # kernel does plain `x @ W`.  Fold the softmax scale into the Q columns.
    wqkv_t = jnp.asarray(w_qkv, jnp.float32).T                 # (C, 3C)
    bqkv = jnp.asarray(b_qkv, jnp.float32)                     # (3C,)
    q_scale = jnp.concatenate([jnp.full((C,), scale, jnp.float32),
                               jnp.ones((2 * C,), jnp.float32)])
    wqkv_t = wqkv_t * q_scale[None, :]
    bqkv = (bqkv * q_scale).reshape(1, 3 * C)                  # f32 bias

    wproj_t = jnp.asarray(w_proj, jnp.float32).T               # (C, C)
    bproj = jnp.asarray(b_proj, jnp.float32).reshape(1, C)     # f32 bias

    # bf16 MXU operands (f32 accumulation inside the kernel); biases stay f32.
    x2d = jnp.asarray(x).reshape(B * N, C).astype(jnp.bfloat16)
    wqkv_bf = wqkv_t.astype(jnp.bfloat16)
    wproj_bf = wproj_t.astype(jnp.bfloat16)

    batch_tile = B                 # whole (tiny) batch per step; larger B would tile here
    grid = (pl.cdiv(B, batch_tile),)

    kernel = functools.partial(_mha_kernel, batch_tile=batch_tile, seq=N,
                               dim=C, num_heads=num_heads, head_dim=head_dim)

    flops = (2 * B * N * C * 3 * C                              # QKV projection
             + 2 * 2 * B * num_heads * N * N * head_dim         # QK^T and PV
             + 2 * B * N * C * C)                               # output projection
    bytes_accessed = (x2d.size * 2 + wqkv_bf.size * 2 + wproj_bf.size * 2
                      + bqkv.size * 4 + bproj.size * 4 + B * N * C * 4)

    out2d = pl.pallas_call(
        kernel,
        out_shape=jax.ShapeDtypeStruct((B * N, C), jnp.float32),
        grid_spec=pltpu.PrefetchScalarGridSpec(
            num_scalar_prefetch=0,
            grid=grid,
            in_specs=[
                pl.BlockSpec((batch_tile * N, C), lambda i: (i, 0)),   # x rows (bf16)
                pl.BlockSpec((C, 3 * C), lambda i: (0, 0)),            # W_qkv^T (bf16)
                pl.BlockSpec((1, 3 * C), lambda i: (0, 0)),            # b_qkv  (f32)
                pl.BlockSpec((C, C), lambda i: (0, 0)),                # W_proj^T (bf16)
                pl.BlockSpec((1, C), lambda i: (0, 0)),                # b_proj (f32)
            ],
            out_specs=pl.BlockSpec((batch_tile * N, C), lambda i: (i, 0)),
        ),
        compiler_params=pltpu.CompilerParams(
            dimension_semantics=("parallel",)),
        cost_estimate=pl.CostEstimate(flops=flops,
                                      transcendentals=B * num_heads * N * N,
                                      bytes_accessed=bytes_accessed),
    )(x2d, wqkv_bf, bqkv, wproj_bf, bproj)

    return out2d.reshape(B, N, C)


def _reference(x, w_qkv, b_qkv, w_proj, b_proj, num_heads):
    """Pure-JAX f32 reference mirroring the PyTorch forward exactly."""
    B, N, C = x.shape
    head_dim = C // num_heads
    scale = head_dim ** (-0.5) + 1e-8
    qkv = x @ w_qkv.T + b_qkv                                  # (B, N, 3C)
    qkv = qkv.reshape(B, N, 3, num_heads, head_dim).transpose(2, 0, 3, 1, 4)
    q, k, v = qkv[0], qkv[1], qkv[2]                           # (B, H, N, Dh)
    attn = jnp.einsum('bhnd,bhmd->bhnm', q, k) * scale
    attn = jax.nn.softmax(attn, axis=-1)
    out = jnp.einsum('bhnm,bhmd->bhnd', attn, v)               # (B, H, N, Dh)
    out = out.transpose(0, 2, 1, 3).reshape(B, N, C)
    return out @ w_proj.T + b_proj


if __name__ == "__main__":
    # Small shapes consistent with the module: dim=32, num_heads=8 -> head_dim=4
    B, N, C = 2, 8, 32
    num_heads = 8

    key = jax.random.PRNGKey(0)
    kx, kw1, kb1, kw2, kb2 = jax.random.split(key, 5)

    x = jax.random.normal(kx, (B, N, C), dtype=jnp.float32)
    # Deterministic synthetic parameters (PyTorch nn.Linear shapes).
    w_qkv = 0.05 * jax.random.normal(kw1, (3 * C, C), dtype=jnp.float32)
    b_qkv = 0.05 * jax.random.normal(kb1, (3 * C,), dtype=jnp.float32)
    w_proj = 0.05 * jax.random.normal(kw2, (C, C), dtype=jnp.float32)
    b_proj = 0.05 * jax.random.normal(kb2, (C,), dtype=jnp.float32)

    out = multi_head_attention(x, w_qkv, b_qkv, w_proj, b_proj,
                               num_heads=num_heads)
    out = jax.block_until_ready(out)

    ref = _reference(x, w_qkv, b_qkv, w_proj, b_proj, num_heads)
    # bf16 MXU operands + approximate reciprocal -> compare with bf16-level tolerance.
    np.testing.assert_allclose(np.asarray(out), np.asarray(ref),
                               rtol=2e-2, atol=2e-2)

    print("KERNEL_OK")
</pallas_src>

<mosaic_0001>
module attributes {stable_mosaic.version = 11 : i64} {
  func.func @_mha_kernel(%arg0: i32, %arg1: memref<16x32xbf16, #tpu.memory_space<vmem>>, %arg2: memref<32x96xbf16, #tpu.memory_space<vmem>>, %arg3: memref<1x96xf32, #tpu.memory_space<vmem>>, %arg4: memref<32x32xbf16, #tpu.memory_space<vmem>>, %arg5: memref<1x32xf32, #tpu.memory_space<vmem>>, %arg6: memref<16x32xf32, #tpu.memory_space<vmem>>) attributes {dimension_semantics = [#tpu.dimension_semantics<parallel>], iteration_bounds = array<i64: 1>, scalar_prefetch = 0 : i64, scratch_operands = 0 : i64, tpu.core_type = #tpu.core_type<tc>, window_params = [{transform_indices = @transform_0, window_bounds = array<i64: 16, 32>}, {pipeline_mode = #tpu.pipeline_mode<synchronous>, transform_indices = @transform_1, window_bounds = array<i64: 32, 96>}, {pipeline_mode = #tpu.pipeline_mode<synchronous>, transform_indices = @transform_2, window_bounds = array<i64: 1, 96>}, {pipeline_mode = #tpu.pipeline_mode<synchronous>, transform_indices = @transform_3, window_bounds = array<i64: 32, 32>}, {pipeline_mode = #tpu.pipeline_mode<synchronous>, transform_indices = @transform_4, window_bounds = array<i64: 1, 32>}, {transform_indices = @transform_5, window_bounds = array<i64: 16, 32>}]} {
    %c0 = arith.constant 0 : index
    %c0_0 = arith.constant 0 : index
    %0 = vector.load %arg1[%c0, %c0_0] : memref<16x32xbf16, #tpu.memory_space<vmem>>, vector<16x32xbf16>
    %c0_1 = arith.constant 0 : index
    %c0_2 = arith.constant 0 : index
    %1 = vector.load %arg2[%c0_1, %c0_2] : memref<32x96xbf16, #tpu.memory_space<vmem>>, vector<32x96xbf16>
    %cst = arith.constant dense<0.000000e+00> : vector<16x96xf32>
    %2 = tpu.matmul %0, %1, %cst {dimension_numbers = #tpu.dot_dimension_numbers<[1], [0], [0], [1], [0, 0, 1, 1], [], []>} : vector<16x32xbf16>, vector<32x96xbf16>, vector<16x96xf32> -> vector<16x96xf32>
    %c0_3 = arith.constant 0 : index
    %c0_4 = arith.constant 0 : index
    %3 = vector.load %arg3[%c0_3, %c0_4] : memref<1x96xf32, #tpu.memory_space<vmem>>, vector<1x96xf32>
    %4 = vector.broadcast %3 : vector<1x96xf32> to vector<16x96xf32>
    %5 = arith.addf %2, %4 : vector<16x96xf32>
    %6 = vector.extract_strided_slice %5 {offsets = [0, 0], sizes = [8, 4], strides = [1, 1]} : vector<16x96xf32> to vector<8x4xf32>
    %7 = vector.extract_strided_slice %5 {offsets = [0, 4], sizes = [8, 4], strides = [1, 1]} : vector<16x96xf32> to vector<8x4xf32>
    %8 = vector.extract_strided_slice %5 {offsets = [0, 8], sizes = [8, 4], strides = [1, 1]} : vector<16x96xf32> to vector<8x4xf32>
    %9 = vector.extract_strided_slice %5 {offsets = [0, 12], sizes = [8, 4], strides = [1, 1]} : vector<16x96xf32> to vector<8x4xf32>
    %10 = vector.extract_strided_slice %5 {offsets = [0, 16], sizes = [8, 4], strides = [1, 1]} : vector<16x96xf32> to vector<8x4xf32>
    %11 = vector.extract_strided_slice %5 {offsets = [0, 20], sizes = [8, 4], strides = [1, 1]} : vector<16x96xf32> to vector<8x4xf32>
    %12 = vector.extract_strided_slice %5 {offsets = [0, 24], sizes = [8, 4], strides = [1, 1]} : vector<16x96xf32> to vector<8x4xf32>
    %13 = vector.extract_strided_slice %5 {offsets = [0, 28], sizes = [8, 4], strides = [1, 1]} : vector<16x96xf32> to vector<8x4xf32>
    %14 = vector.extract_strided_slice %5 {offsets = [8, 0], sizes = [8, 4], strides = [1, 1]} : vector<16x96xf32> to vector<8x4xf32>
    %15 = vector.extract_strided_slice %5 {offsets = [8, 4], sizes = [8, 4], strides = [1, 1]} : vector<16x96xf32> to vector<8x4xf32>
    %16 = vector.extract_strided_slice %5 {offsets = [8, 8], sizes = [8, 4], strides = [1, 1]} : vector<16x96xf32> to vector<8x4xf32>
    %17 = vector.extract_strided_slice %5 {offsets = [8, 12], sizes = [8, 4], strides = [1, 1]} : vector<16x96xf32> to vector<8x4xf32>
    %18 = vector.extract_strided_slice %5 {offsets = [8, 16], sizes = [8, 4], strides = [1, 1]} : vector<16x96xf32> to vector<8x4xf32>
    %19 = vector.extract_strided_slice %5 {offsets = [8, 20], sizes = [8, 4], strides = [1, 1]} : vector<16x96xf32> to vector<8x4xf32>
    %20 = vector.extract_strided_slice %5 {offsets = [8, 24], sizes = [8, 4], strides = [1, 1]} : vector<16x96xf32> to vector<8x4xf32>
    %21 = vector.extract_strided_slice %5 {offsets = [8, 28], sizes = [8, 4], strides = [1, 1]} : vector<16x96xf32> to vector<8x4xf32>
    %22 = vector.shape_cast %6 : vector<8x4xf32> to vector<1x8x4xf32>
    %23 = vector.shape_cast %7 : vector<8x4xf32> to vector<1x8x4xf32>
    %24 = vector.shape_cast %8 : vector<8x4xf32> to vector<1x8x4xf32>
    %25 = vector.shape_cast %9 : vector<8x4xf32> to vector<1x8x4xf32>
    %26 = vector.shape_cast %10 : vector<8x4xf32> to vector<1x8x4xf32>
    %27 = vector.shape_cast %11 : vector<8x4xf32> to vector<1x8x4xf32>
    %28 = vector.shape_cast %12 : vector<8x4xf32> to vector<1x8x4xf32>
    %29 = vector.shape_cast %13 : vector<8x4xf32> to vector<1x8x4xf32>
    %30 = vector.shape_cast %14 : vector<8x4xf32> to vector<1x8x4xf32>
    %31 = vector.shape_cast %15 : vector<8x4xf32> to vector<1x8x4xf32>
    %32 = vector.shape_cast %16 : vector<8x4xf32> to vector<1x8x4xf32>
    %33 = vector.shape_cast %17 : vector<8x4xf32> to vector<1x8x4xf32>
    %34 = vector.shape_cast %18 : vector<8x4xf32> to vector<1x8x4xf32>
    %35 = vector.shape_cast %19 : vector<8x4xf32> to vector<1x8x4xf32>
    %36 = vector.shape_cast %20 : vector<8x4xf32> to vector<1x8x4xf32>
    %37 = vector.shape_cast %21 : vector<8x4xf32> to vector<1x8x4xf32>
    %38 = tpu.concatenate %22, %23, %24, %25, %26, %27, %28, %29, %30, %31, %32, %33, %34, %35, %36, %37 in 0 : vector<1x8x4xf32>, vector<1x8x4xf32>, vector<1x8x4xf32>, vector<1x8x4xf32>, vector<1x8x4xf32>, vector<1x8x4xf32>, vector<1x8x4xf32>, vector<1x8x4xf32>, vector<1x8x4xf32>, vector<1x8x4xf32>, vector<1x8x4xf32>, vector<1x8x4xf32>, vector<1x8x4xf32>, vector<1x8x4xf32>, vector<1x8x4xf32>, vector<1x8x4xf32> -> vector<16x8x4xf32>
    %39 = arith.truncf %38 : vector<16x8x4xf32> to vector<16x8x4xbf16>
    %40 = vector.extract_strided_slice %5 {offsets = [0, 32], sizes = [8, 4], strides = [1, 1]} : vector<16x96xf32> to vector<8x4xf32>
    %41 = vector.extract_strided_slice %5 {offsets = [0, 36], sizes = [8, 4], strides = [1, 1]} : vector<16x96xf32> to vector<8x4xf32>
    %42 = vector.extract_strided_slice %5 {offsets = [0, 40], sizes = [8, 4], strides = [1, 1]} : vector<16x96xf32> to vector<8x4xf32>
    %43 = vector.extract_strided_slice %5 {offsets = [0, 44], sizes = [8, 4], strides = [1, 1]} : vector<16x96xf32> to vector<8x4xf32>
    %44 = vector.extract_strided_slice %5 {offsets = [0, 48], sizes = [8, 4], strides = [1, 1]} : vector<16x96xf32> to vector<8x4xf32>
    %45 = vector.extract_strided_slice %5 {offsets = [0, 52], sizes = [8, 4], strides = [1, 1]} : vector<16x96xf32> to vector<8x4xf32>
    %46 = vector.extract_strided_slice %5 {offsets = [0, 56], sizes = [8, 4], strides = [1, 1]} : vector<16x96xf32> to vector<8x4xf32>
    %47 = vector.extract_strided_slice %5 {offsets = [0, 60], sizes = [8, 4], strides = [1, 1]} : vector<16x96xf32> to vector<8x4xf32>
    %48 = vector.extract_strided_slice %5 {offsets = [8, 32], sizes = [8, 4], strides = [1, 1]} : vector<16x96xf32> to vector<8x4xf32>
    %49 = vector.extract_strided_slice %5 {offsets = [8, 36], sizes = [8, 4], strides = [1, 1]} : vector<16x96xf32> to vector<8x4xf32>
    %50 = vector.extract_strided_slice %5 {offsets = [8, 40], sizes = [8, 4], strides = [1, 1]} : vector<16x96xf32> to vector<8x4xf32>
    %51 = vector.extract_strided_slice %5 {offsets = [8, 44], sizes = [8, 4], strides = [1, 1]} : vector<16x96xf32> to vector<8x4xf32>
    %52 = vector.extract_strided_slice %5 {offsets = [8, 48], sizes = [8, 4], strides = [1, 1]} : vector<16x96xf32> to vector<8x4xf32>
    %53 = vector.extract_strided_slice %5 {offsets = [8, 52], sizes = [8, 4], strides = [1, 1]} : vector<16x96xf32> to vector<8x4xf32>
    %54 = vector.extract_strided_slice %5 {offsets = [8, 56], sizes = [8, 4], strides = [1, 1]} : vector<16x96xf32> to vector<8x4xf32>
    %55 = vector.extract_strided_slice %5 {offsets = [8, 60], sizes = [8, 4], strides = [1, 1]} : vector<16x96xf32> to vector<8x4xf32>
    %56 = vector.shape_cast %40 : vector<8x4xf32> to vector<1x8x4xf32>
    %57 = vector.shape_cast %41 : vector<8x4xf32> to vector<1x8x4xf32>
    %58 = vector.shape_cast %42 : vector<8x4xf32> to vector<1x8x4xf32>
    %59 = vector.shape_cast %43 : vector<8x4xf32> to vector<1x8x4xf32>
    %60 = vector.shape_cast %44 : vector<8x4xf32> to vector<1x8x4xf32>
    %61 = vector.shape_cast %45 : vector<8x4xf32> to vector<1x8x4xf32>
    %62 = vector.shape_cast %46 : vector<8x4xf32> to vector<1x8x4xf32>
    %63 = vector.shape_cast %47 : vector<8x4xf32> to vector<1x8x4xf32>
    %64 = vector.shape_cast %48 : vector<8x4xf32> to vector<1x8x4xf32>
    %65 = vector.shape_cast %49 : vector<8x4xf32> to vector<1x8x4xf32>
    %66 = vector.shape_cast %50 : vector<8x4xf32> to vector<1x8x4xf32>
    %67 = vector.shape_cast %51 : vector<8x4xf32> to vector<1x8x4xf32>
    %68 = vector.shape_cast %52 : vector<8x4xf32> to vector<1x8x4xf32>
    %69 = vector.shape_cast %53 : vector<8x4xf32> to vector<1x8x4xf32>
    %70 = vector.shape_cast %54 : vector<8x4xf32> to vector<1x8x4xf32>
    %71 = vector.shape_cast %55 : vector<8x4xf32> to vector<1x8x4xf32>
    %72 = tpu.concatenate %56, %57, %58, %59, %60, %61, %62, %63, %64, %65, %66, %67, %68, %69, %70, %71 in 0 : vector<1x8x4xf32>, vector<1x8x4xf32>, vector<1x8x4xf32>, vector<1x8x4xf32>, vector<1x8x4xf32>, vector<1x8x4xf32>, vector<1x8x4xf32>, vector<1x8x4xf32>, vector<1x8x4xf32>, vector<1x8x4xf32>, vector<1x8x4xf32>, vector<1x8x4xf32>, vector<1x8x4xf32>, vector<1x8x4xf32>, vector<1x8x4xf32>, vector<1x8x4xf32> -> vector<16x8x4xf32>
    %73 = arith.truncf %72 : vector<16x8x4xf32> to vector<16x8x4xbf16>
    %74 = vector.extract_strided_slice %5 {offsets = [0, 64], sizes = [8, 4], strides = [1, 1]} : vector<16x96xf32> to vector<8x4xf32>
    %75 = vector.extract_strided_slice %5 {offsets = [0, 68], sizes = [8, 4], strides = [1, 1]} : vector<16x96xf32> to vector<8x4xf32>
    %76 = vector.extract_strided_slice %5 {offsets = [0, 72], sizes = [8, 4], strides = [1, 1]} : vector<16x96xf32> to vector<8x4xf32>
    %77 = vector.extract_strided_slice %5 {offsets = [0, 76], sizes = [8, 4], strides = [1, 1]} : vector<16x96xf32> to vector<8x4xf32>
    %78 = vector.extract_strided_slice %5 {offsets = [0, 80], sizes = [8, 4], strides = [1, 1]} : vector<16x96xf32> to vector<8x4xf32>
    %79 = vector.extract_strided_slice %5 {offsets = [0, 84], sizes = [8, 4], strides = [1, 1]} : vector<16x96xf32> to vector<8x4xf32>
    %80 = vector.extract_strided_slice %5 {offsets = [0, 88], sizes = [8, 4], strides = [1, 1]} : vector<16x96xf32> to vector<8x4xf32>
    %81 = vector.extract_strided_slice %5 {offsets = [0, 92], sizes = [8, 4], strides = [1, 1]} : vector<16x96xf32> to vector<8x4xf32>
    %82 = vector.extract_strided_slice %5 {offsets = [8, 64], sizes = [8, 4], strides = [1, 1]} : vector<16x96xf32> to vector<8x4xf32>
    %83 = vector.extract_strided_slice %5 {offsets = [8, 68], sizes = [8, 4], strides = [1, 1]} : vector<16x96xf32> to vector<8x4xf32>
    %84 = vector.extract_strided_slice %5 {offsets = [8, 72], sizes = [8, 4], strides = [1, 1]} : vector<16x96xf32> to vector<8x4xf32>
    %85 = vector.extract_strided_slice %5 {offsets = [8, 76], sizes = [8, 4], strides = [1, 1]} : vector<16x96xf32> to vector<8x4xf32>
    %86 = vector.extract_strided_slice %5 {offsets = [8, 80], sizes = [8, 4], strides = [1, 1]} : vector<16x96xf32> to vector<8x4xf32>
    %87 = vector.extract_strided_slice %5 {offsets = [8, 84], sizes = [8, 4], strides = [1, 1]} : vector<16x96xf32> to vector<8x4xf32>
    %88 = vector.extract_strided_slice %5 {offsets = [8, 88], sizes = [8, 4], strides = [1, 1]} : vector<16x96xf32> to vector<8x4xf32>
    %89 = vector.extract_strided_slice %5 {offsets = [8, 92], sizes = [8, 4], strides = [1, 1]} : vector<16x96xf32> to vector<8x4xf32>
    %90 = vector.shape_cast %74 : vector<8x4xf32> to vector<1x8x4xf32>
    %91 = vector.shape_cast %75 : vector<8x4xf32> to vector<1x8x4xf32>
    %92 = vector.shape_cast %76 : vector<8x4xf32> to vector<1x8x4xf32>
    %93 = vector.shape_cast %77 : vector<8x4xf32> to vector<1x8x4xf32>
    %94 = vector.shape_cast %78 : vector<8x4xf32> to vector<1x8x4xf32>
    %95 = vector.shape_cast %79 : vector<8x4xf32> to vector<1x8x4xf32>
    %96 = vector.shape_cast %80 : vector<8x4xf32> to vector<1x8x4xf32>
    %97 = vector.shape_cast %81 : vector<8x4xf32> to vector<1x8x4xf32>
    %98 = vector.shape_cast %82 : vector<8x4xf32> to vector<1x8x4xf32>
    %99 = vector.shape_cast %83 : vector<8x4xf32> to vector<1x8x4xf32>
    %100 = vector.shape_cast %84 : vector<8x4xf32> to vector<1x8x4xf32>
    %101 = vector.shape_cast %85 : vector<8x4xf32> to vector<1x8x4xf32>
    %102 = vector.shape_cast %86 : vector<8x4xf32> to vector<1x8x4xf32>
    %103 = vector.shape_cast %87 : vector<8x4xf32> to vector<1x8x4xf32>
    %104 = vector.shape_cast %88 : vector<8x4xf32> to vector<1x8x4xf32>
    %105 = vector.shape_cast %89 : vector<8x4xf32> to vector<1x8x4xf32>
    %106 = tpu.concatenate %90, %91, %92, %93, %94, %95, %96, %97, %98, %99, %100, %101, %102, %103, %104, %105 in 0 : vector<1x8x4xf32>, vector<1x8x4xf32>, vector<1x8x4xf32>, vector<1x8x4xf32>, vector<1x8x4xf32>, vector<1x8x4xf32>, vector<1x8x4xf32>, vector<1x8x4xf32>, vector<1x8x4xf32>, vector<1x8x4xf32>, vector<1x8x4xf32>, vector<1x8x4xf32>, vector<1x8x4xf32>, vector<1x8x4xf32>, vector<1x8x4xf32>, vector<1x8x4xf32> -> vector<16x8x4xf32>
    %107 = arith.truncf %106 : vector<16x8x4xf32> to vector<16x8x4xbf16>
    "tpu.trace_start"() <{level = 10 : i32, message = "hnd,hmd->hnm"}> : () -> ()
    %cst_5 = arith.constant dense<0.000000e+00> : vector<16x8x8xf32>
    %108 = tpu.matmul %39, %73, %cst_5 {dimension_numbers = #tpu.dot_dimension_numbers<[2], [2], [1], [1], [0, 0, 0, 1, 1, 1], [0], [0]>} : vector<16x8x4xbf16>, vector<16x8x4xbf16>, vector<16x8x8xf32> -> vector<16x8x8xf32>
    "tpu.trace_stop"() : () -> ()
    %cst_6 = arith.constant dense<0xFF800000> : vector<16x8xf32>
    %109 = vector.multi_reduction <maximumf>, %108, %cst_6 [2] : vector<16x8x8xf32> to vector<16x8xf32>
    %110 = vector.shape_cast %109 : vector<16x8xf32> to vector<16x8x1xf32>
    %111 = vector.broadcast %110 : vector<16x8x1xf32> to vector<16x8x8xf32>
    %112 = arith.subf %108, %111 : vector<16x8x8xf32>
    %113 = math.exp %112 : vector<16x8x8xf32>
    %cst_7 = arith.constant dense<0.000000e+00> : vector<16x8xf32>
    %114 = vector.multi_reduction <add>, %113, %cst_7 [2] : vector<16x8x8xf32> to vector<16x8xf32>
    %115 = vector.shape_cast %114 : vector<16x8xf32> to vector<16x8x1xf32>
    %116 = tpu.reciprocal %115 {approx = true} : vector<16x8x1xf32> -> vector<16x8x1xf32>
    %117 = vector.broadcast %116 : vector<16x8x1xf32> to vector<16x8x8xf32>
    %118 = arith.mulf %113, %117 : vector<16x8x8xf32>
    %119 = arith.truncf %118 : vector<16x8x8xf32> to vector<16x8x8xbf16>
    "tpu.trace_start"() <{level = 10 : i32, message = "hnm,hmd->hnd"}> : () -> ()
    %cst_8 = arith.constant dense<0.000000e+00> : vector<16x8x4xf32>
    %120 = tpu.matmul %119, %107, %cst_8 {dimension_numbers = #tpu.dot_dimension_numbers<[2], [1], [1], [2], [0, 0, 0, 1, 1, 2], [0], [0]>} : vector<16x8x8xbf16>, vector<16x8x4xbf16>, vector<16x8x4xf32> -> vector<16x8x4xf32>
    "tpu.trace_stop"() : () -> ()
    %121 = vector.extract_strided_slice %120 {offsets = [0, 0, 0], sizes = [1, 8, 4], strides = [1, 1, 1]} : vector<16x8x4xf32> to vector<1x8x4xf32>
    %122 = vector.shape_cast %121 : vector<1x8x4xf32> to vector<8x4xf32>
    %123 = vector.extract_strided_slice %120 {offsets = [1, 0, 0], sizes = [1, 8, 4], strides = [1, 1, 1]} : vector<16x8x4xf32> to vector<1x8x4xf32>
    %124 = vector.shape_cast %123 : vector<1x8x4xf32> to vector<8x4xf32>
    %125 = vector.extract_strided_slice %120 {offsets = [2, 0, 0], sizes = [1, 8, 4], strides = [1, 1, 1]} : vector<16x8x4xf32> to vector<1x8x4xf32>
    %126 = vector.shape_cast %125 : vector<1x8x4xf32> to vector<8x4xf32>
    %127 = vector.extract_strided_slice %120 {offsets = [3, 0, 0], sizes = [1, 8, 4], strides = [1, 1, 1]} : vector<16x8x4xf32> to vector<1x8x4xf32>
    %128 = vector.shape_cast %127 : vector<1x8x4xf32> to vector<8x4xf32>
    %129 = vector.extract_strided_slice %120 {offsets = [4, 0, 0], sizes = [1, 8, 4], strides = [1, 1, 1]} : vector<16x8x4xf32> to vector<1x8x4xf32>
    %130 = vector.shape_cast %129 : vector<1x8x4xf32> to vector<8x4xf32>
    %131 = vector.extract_strided_slice %120 {offsets = [5, 0, 0], sizes = [1, 8, 4], strides = [1, 1, 1]} : vector<16x8x4xf32> to vector<1x8x4xf32>
    %132 = vector.shape_cast %131 : vector<1x8x4xf32> to vector<8x4xf32>
    %133 = vector.extract_strided_slice %120 {offsets = [6, 0, 0], sizes = [1, 8, 4], strides = [1, 1, 1]} : vector<16x8x4xf32> to vector<1x8x4xf32>
    %134 = vector.shape_cast %133 : vector<1x8x4xf32> to vector<8x4xf32>
    %135 = vector.extract_strided_slice %120 {offsets = [7, 0, 0], sizes = [1, 8, 4], strides = [1, 1, 1]} : vector<16x8x4xf32> to vector<1x8x4xf32>
    %136 = vector.shape_cast %135 : vector<1x8x4xf32> to vector<8x4xf32>
    %137 = tpu.concatenate %122, %124, %126, %128, %130, %132, %134, %136 in 1 : vector<8x4xf32>, vector<8x4xf32>, vector<8x4xf32>, vector<8x4xf32>, vector<8x4xf32>, vector<8x4xf32>, vector<8x4xf32>, vector<8x4xf32> -> vector<8x32xf32>
    %138 = vector.extract_strided_slice %120 {offsets = [8, 0, 0], sizes = [1, 8, 4], strides = [1, 1, 1]} : vector<16x8x4xf32> to vector<1x8x4xf32>
    %139 = vector.shape_cast %138 : vector<1x8x4xf32> to vector<8x4xf32>
    %140 = vector.extract_strided_slice %120 {offsets = [9, 0, 0], sizes = [1, 8, 4], strides = [1, 1, 1]} : vector<16x8x4xf32> to vector<1x8x4xf32>
    %141 = vector.shape_cast %140 : vector<1x8x4xf32> to vector<8x4xf32>
    %142 = vector.extract_strided_slice %120 {offsets = [10, 0, 0], sizes = [1, 8, 4], strides = [1, 1, 1]} : vector<16x8x4xf32> to vector<1x8x4xf32>
    %143 = vector.shape_cast %142 : vector<1x8x4xf32> to vector<8x4xf32>
    %144 = vector.extract_strided_slice %120 {offsets = [11, 0, 0], sizes = [1, 8, 4], strides = [1, 1, 1]} : vector<16x8x4xf32> to vector<1x8x4xf32>
    %145 = vector.shape_cast %144 : vector<1x8x4xf32> to vector<8x4xf32>
    %146 = vector.extract_strided_slice %120 {offsets = [12, 0, 0], sizes = [1, 8, 4], strides = [1, 1, 1]} : vector<16x8x4xf32> to vector<1x8x4xf32>
    %147 = vector.shape_cast %146 : vector<1x8x4xf32> to vector<8x4xf32>
    %148 = vector.extract_strided_slice %120 {offsets = [13, 0, 0], sizes = [1, 8, 4], strides = [1, 1, 1]} : vector<16x8x4xf32> to vector<1x8x4xf32>
    %149 = vector.shape_cast %148 : vector<1x8x4xf32> to vector<8x4xf32>
    %150 = vector.extract_strided_slice %120 {offsets = [14, 0, 0], sizes = [1, 8, 4], strides = [1, 1, 1]} : vector<16x8x4xf32> to vector<1x8x4xf32>
    %151 = vector.shape_cast %150 : vector<1x8x4xf32> to vector<8x4xf32>
    %152 = vector.extract_strided_slice %120 {offsets = [15, 0, 0], sizes = [1, 8, 4], strides = [1, 1, 1]} : vector<16x8x4xf32> to vector<1x8x4xf32>
    %153 = vector.shape_cast %152 : vector<1x8x4xf32> to vector<8x4xf32>
    %154 = tpu.concatenate %139, %141, %143, %145, %147, %149, %151, %153 in 1 : vector<8x4xf32>, vector<8x4xf32>, vector<8x4xf32>, vector<8x4xf32>, vector<8x4xf32>, vector<8x4xf32>, vector<8x4xf32>, vector<8x4xf32> -> vector<8x32xf32>
    %155 = tpu.concatenate %137, %154 in 0 : vector<8x32xf32>, vector<8x32xf32> -> vector<16x32xf32>
    %156 = arith.truncf %155 : vector<16x32xf32> to vector<16x32xbf16>
    %c0_9 = arith.constant 0 : index
    %c0_10 = arith.constant 0 : index
    %157 = vector.load %arg4[%c0_9, %c0_10] : memref<32x32xbf16, #tpu.memory_space<vmem>>, vector<32x32xbf16>
    %cst_11 = arith.constant dense<0.000000e+00> : vector<16x32xf32>
    %158 = tpu.matmul %156, %157, %cst_11 {dimension_numbers = #tpu.dot_dimension_numbers<[1], [0], [0], [1], [0, 0, 1, 1], [], []>} : vector<16x32xbf16>, vector<32x32xbf16>, vector<16x32xf32> -> vector<16x32xf32>
    %c0_12 = arith.constant 0 : index
    %c0_13 = arith.constant 0 : index
    %159 = vector.load %arg5[%c0_12, %c0_13] : memref<1x32xf32, #tpu.memory_space<vmem>>, vector<1x32xf32>
    %160 = vector.broadcast %159 : vector<1x32xf32> to vector<16x32xf32>
    %161 = arith.addf %158, %160 : vector<16x32xf32>
    %c0_14 = arith.constant 0 : index
    %c0_15 = arith.constant 0 : index
    %162 = vector.load %arg6[%c0_14, %c0_15] : memref<16x32xf32, #tpu.memory_space<vmem>>, vector<16x32xf32>
    tpu.vector_store %arg6[%c0_14, %c0_15], %161 {strides = array<i32>} : memref<16x32xf32, #tpu.memory_space<vmem>>, vector<16x32xf32>,
    return
  }
  func.func @transform_0(%arg0: i32) -> (i32, i32) {
    %c0_i32 = arith.constant 0 : i32
    %c0_i32_0 = arith.constant 0 : i32
    return %arg0, %c0_i32 : i32, i32
  }
  func.func @transform_1(%arg0: i32) -> (i32, i32) {
    %c0_i32 = arith.constant 0 : i32
    %c0_i32_0 = arith.constant 0 : i32
    %c0_i32_1 = arith.constant 0 : i32
    return %c0_i32, %c0_i32_0 : i32, i32
  }
  func.func @transform_2(%arg0: i32) -> (i32, i32) {
    %c0_i32 = arith.constant 0 : i32
    %c0_i32_0 = arith.constant 0 : i32
    %c0_i32_1 = arith.constant 0 : i32
    return %c0_i32, %c0_i32_0 : i32, i32
  }
  func.func @transform_3(%arg0: i32) -> (i32, i32) {
    %c0_i32 = arith.constant 0 : i32
    %c0_i32_0 = arith.constant 0 : i32
    %c0_i32_1 = arith.constant 0 : i32
    return %c0_i32, %c0_i32_0 : i32, i32
  }
  func.func @transform_4(%arg0: i32) -> (i32, i32) {
    %c0_i32 = arith.constant 0 : i32
    %c0_i32_0 = arith.constant 0 : i32
    %c0_i32_1 = arith.constant 0 : i32
    return %c0_i32, %c0_i32_0 : i32, i32
  }
  func.func @transform_5(%arg0: i32) -> (i32, i32) {
    %c0_i32 = arith.constant 0 : i32
    %c0_i32_0 = arith.constant 0 : i32
    return %arg0, %c0_i32 : i32, i32
  }
}

</mosaic_0001>

<bundles_post_ra>
// kernel: tpu_custom_call.1
= control target key start
LH: loop header
LB: loop body
LE: loop exit
PB: predicated region body
PF: predicated region fallthrough
CT: control target
= control target key end

     0   :  { %10 = vsyncpa [#allocation3], 0  ;;  %s1969_s0 = inlined_call_operand.hbm [shape: bf16[16,32], index: 0, kind: input, shape index: {}]   ;;  %s1970_s1 = inlined_call_operand.hbm [shape: bf16[32,96], index: 1, kind: input, shape index: {}]   ;;  %s1971_s2 = inlined_call_operand.vmem [shape: f32[1,96], index: 2, kind: input, shape index: {}]   ;;  %s1972_s3 = inlined_call_operand.hbm [shape: bf16[32,32], index: 3, kind: input, shape index: {}]   ;;  %s1973_s4 = inlined_call_operand.vmem [shape: f32[1,32], index: 4, kind: input, shape index: {}]   ;;  %s1974_s5 = inlined_call_operand.hbm [shape: f32[16,32], index: 5, kind: output, shape index: {}]  }
   0x1   :  { %11 = vsyncpa [#allocation6], 0 }
   0x2   :  { %12 = vsyncpa [#allocation4], 0  ;;  %s30_s20 = sshll.u32 %s1970_s1, 4  ;;  %s1507_s21 = smov [#allocation5]   ;;  %s31_s20 = int_to_ptr.hbm [resolvable:$true] %s30_s20 }
   0x3   :  { %s32_s22 = sshll.u32 %s1507_s21, 4  ;;  %s17_s25 = sshll.u32 %s1969_s0, 4  ;;  %s33_s22 = int_to_ptr.vmem [resolvable:$true] %s32_s22  ;;  %s18_s25 = int_to_ptr.hbm [resolvable:$true] %s17_s25 }
   0x4   :  { %s1508_s26 = smov 64   ;;  %s1509_s27 = smov 4  }
   0x5   :  { %38 = dma.hbm_to_vmem [thread:$0]  %s31_s20, 256, %s33_s22, [#allocation6], %s1508_s26, %s1508_s26, %s1509_s27  }
   0x6   :  { %s1510_s28 = smov [#allocation2]   ;;  %s45_s1 = sshll.u32 %s1972_s3, 4  ;;  %s46_s1 = int_to_ptr.hbm [resolvable:$true] %s45_s1 }
   0x7   :  { %s19_s29 = sshll.u32 %s1510_s28, 4  ;;  %s1511_s0 = smov [#allocation7]   ;;  %s20_s29 = int_to_ptr.vmem [resolvable:$true] %s19_s29 }
   0x8   :  { %25 = dma.hbm_to_vmem [thread:$0]  %s18_s25, 128, %s20_s29, [#allocation3], %s1508_s26, %s1508_s26, %s1509_s27  }
   0x9   :  { %s47_s7 = sshll.u32 %s1511_s0, 4  ;;  %s48_s7 = int_to_ptr.vmem [resolvable:$true] %s47_s7 }
   0xa   :  { %53 = dma.hbm_to_vmem [thread:$0]  %s46_s1, 256, %s48_s7, [#allocation6], %s1508_s26, %s1508_s26, %s1509_s27  }
   0xb   :  { %1501 = dma.done.wait [#allocation3], 128  }
   0xc   :  { %1502 = vsyncadd [#allocation3], 4294967168 }
   0xd   :  { %1503 = dma.done.wait [#allocation6], 512  }
   0xe   :  { %1504 = vsyncadd [#allocation6], 4294966784  ;;  %v1280_v0 = vld [vmem:[#allocation5 + $0x8] sm:$0xff]  ;;  %v1279_v1 = vld [vmem:[#allocation5] sm:$0xff]  ;;  %vm96_vm0 = vcmask 261120   ;;  %s1512_s9 = smov 104  }
   0xf   :  { %106 = vmatpush.bf16.msra.mxu0 %v1280_v0  ;;  %v1278_v2 = vld [vmem:[#allocation2] sm:$0xff]  ;;  %s1513_s10 = smov 116   ;;  %s1514_s11 = smov 124   ;;  %vm179_vm1 = vcmask 31744   ;;  %vm757_vm2 = vcmask 1043456   ;;  %vm559_vm3 = vcmask 64512  }
  0x10   :  { %v1339_v3 = vld [vmem:[%s1971_s2] ss:$0 sm:$0xff]  ;;  %s1515_s12 = smov 112   ;;  %s1516_s13 = smov 108   ;;  %vm1119_vm4 = vcmask 97280   ;;  %vm1121_vm5 = vcmask 130048  }
  0x11   :  { %s1517_s14 = smov 120   ;;  %s1518_s2 = smov 100   ;;  %vm1123_vm6 = vcmask 162816   ;;  %vm1125_vm7 = vcmask 195584   ;;  %vm1127_vm8 = vcmask 228352  }
  0x12   :  { %s1519_s15 = smov 96   ;;  %s1520_s16 = smov 12  }
  0x13   :  { %107 = vmatpush.bf16.msra.mxu0 %v1279_v1  ;;  %s1521_s17 = smov 16   ;;  %s1522_s18 = smov 8  }
  0x14   :  { %s1523_s19 = smov 28   ;;  %s1524_s20 = smov 20  }
  0x15   :  { %s1525_s21 = smov 24   ;;  %s1526_s24 = smov [#allocation8]  }
  0x16   :  { %1236 = vmatmul.msk.bf16.vlgmr.msra.gmra.mxu0 %vm96_vm0, %v1278_v2  ;;  %s1208_s25 = sshll.u32 %s1526_s24, 4  ;;  %s1210_s28 = sshll.u32 %s1974_s5, 4  ;;  %s1209_s25 = int_to_ptr.vmem [resolvable:$true] %s1208_s25  ;;  %s1211_s28 = int_to_ptr.hbm [resolvable:$true] %s1210_s28 }
  0x17   :  { %s1527_s29 = smov 128  }
  0x93   :  { %v109_v4 = vpop.f32.mrf.mxu0 }
  0x94   :  { %v110_v5 = vadd.f32 %v1339_v3, %v109_v4 }
  0x96   :  { %130 = vrot.lane.b32.xlu2 %v110_v5, %s1512_s9  ;;  %121 = vrot.lane.b32.xlu1 %v110_v5, %s1513_s10  ;;  %v1601_v25 = vpack.c.bf16 %v110_v5, %v110_v5 }
  0x97   :  { %115 = vrot.lane.b32.xlu0 %v110_v5, %s1514_s11 }
  0x98   :  { %v175_v28 = vunpack.c.l.b16 %v1601_v25 }
  0x9a   :  { %v176_v32 = vpack.c.b16 %v175_v28, %v175_v28 }
  0x9b   :  { %v111_v6 = vpop.f32.mrf.mxu0 }
  0x9c   :  { %v112_v7 = vadd.f32 %v1339_v3, %v111_v6 }
  0x9e   :  { %124 = vrot.lane.b32.xlu2 %v110_v5, %s1515_s12  ;;  %127 = vrot.lane.b32.xlu1 %v110_v5, %s1516_s13  ;;  %v1641_v49 = vpack.c.bf16 %v112_v7, %v112_v7 }
  0x9f   :  { %118 = vrot.lane.b32.xlu0 %v110_v5, %s1517_s14 }
  0xa0   :  { %v368_v51 = vunpack.c.l.b16 %v1641_v49 }
  0xa2   :  { %v369_v55 = vpack.c.b16 %v368_v51, %v368_v51 }
  0xa6   :  { %140 = vrot.lane.b32.xlu2 %v112_v7, %s1517_s14  ;;  %137 = vrot.lane.b32.xlu1 %v112_v7, %s1514_s11 }
  0xa7   :  { %133 = vrot.lane.b32.xlu0 %v110_v5, %s1518_s2 }
  0xae   :  { %143 = vrot.lane.b32.xlu1 %v112_v7, %s1513_s10 }
  0xb6   :  { %152 = vrot.lane.b32.xlu1 %v112_v7, %s1512_s9 }
  0xf0   :  { %v131_v11 = vpop.permute.xlu2 %130 }
  0xf1   :  { %v1589_v15 = vpack.c.bf16 %v131_v11, %v131_v11 }
  0xf3   :  { %v320_v19 = vunpack.c.l.b16 %v1589_v15 }
  0xf5   :  { %v1597_v23 = vpack.c.b16 %v320_v19, %v320_v19 }
  0xf8   :  { %v125_v34 = vpop.permute.xlu2 %124 }
  0xf9   :  { %v1626_v40 = vpack.c.bf16 %v125_v34, %v125_v34 }
  0xfb   :  { %v272_v43 = vunpack.c.l.b16 %v1626_v40 }
  0xfd   :  { %v273_v46 = vpack.c.b16 %v272_v43, %v272_v43 }
 0x100   :  { %v141_v45 = vpop.permute.xlu2 %140 }
 0x101   :  { %v1639_v47 = vpack.c.bf16 %v141_v45, %v141_v45 }
 0x103   :  { %v416_v50 = vunpack.c.l.b16 %v1639_v47 }
 0x105   :  { %v1647_v53 = vpack.c.b16 %v416_v50, %v416_v50 }
 0x108   :  { %v122_v8 = vpop.permute.xlu1 %121 }
 0x109   :  { %v1583_v9 = vpack.c.bf16 %v122_v8, %v122_v8  ;;  %v116_v10 = vpop.permute.xlu0 %115 }
 0x10a   :  { %v1585_v12 = vpack.c.bf16 %v116_v10, %v116_v10 }
 0x10b   :  { %v248_v13 = vunpack.c.l.b16 %v1583_v9 }
 0x10c   :  { %v200_v14 = vunpack.c.l.b16 %v1585_v12 }
 0x10d   :  { %v249_v16 = vpack.c.b16 %v248_v13, %v248_v13 }
 0x10e   :  { %v1591_v17 = vpack.c.b16 %v200_v14, %v200_v14 }
 0x10f   :  { %250 = vrot.lane.b32.xlu1 %v249_v16, %s1519_s15 }
 0x110   :  { %202 = vrot.lane.b32.xlu0 %v1591_v17, %s1519_s15  ;;  %v128_v18 = vpop.permute.xlu1 %127 }
 0x111   :  { %v119_v20 = vpop.permute.xlu0 %118  ;;  %v1614_v31 = vpack.c.bf16 %v128_v18, %v128_v18 }
 0x112   :  { %v160_v21 = vpack.c.bf16 %v119_v20, %v119_v20 }
 0x113   :  { %v296_v36 = vunpack.c.l.b16 %v1614_v31 }
 0x114   :  { %v224_v22 = vunpack.c.l.b16 %v160_v21 }
 0x115   :  { %v1628_v41 = vpack.c.b16 %v296_v36, %v296_v36 }
 0x116   :  { %v1599_v24 = vpack.c.b16 %v224_v22, %v224_v22 }
 0x117   :  { %322 = vrot.lane.b32.xlu1 %v1597_v23, %s1519_s15 }
 0x118   :  { %149 = vrot.lane.b32.xlu0 %v112_v7, %s1516_s13  ;;  %226 = vrot.lane.b32.xlu2 %v1599_v24, %s1519_s15  ;;  %v138_v26 = vpop.permute.xlu1 %137 }
 0x119   :  { %v1608_v27 = vpack.c.bf16 %v138_v26, %v138_v26  ;;  %v134_v37 = vpop.permute.xlu0 %133 }
 0x11a   :  { %v1630_v42 = vpack.c.bf16 %v134_v37, %v134_v37 }
 0x11b   :  { %v392_v29 = vunpack.c.l.b16 %v1608_v27 }
 0x11c   :  { %v344_v44 = vunpack.c.l.b16 %v1630_v42 }
 0x11d   :  { %v1612_v30 = vpack.c.b16 %v392_v29, %v392_v29 }
 0x11e   :  { %v345_v48 = vpack.c.b16 %v344_v44, %v344_v44 }
 0x11f   :  { %394 = vrot.lane.b32.xlu1 %v1612_v30, %s1519_s15 }
 0x120   :  { %146 = vrot.lane.b32.xlu0 %v112_v7, %s1515_s12  ;;  %177 = vrot.lane.b32.xlu2 %v176_v32, %s1519_s15  ;;  %v144_v33 = vpop.permute.xlu1 %143 }
 0x121   :  { %v1620_v35 = vpack.c.bf16 %v144_v33, %v144_v33 }
 0x123   :  { %v440_v38 = vunpack.c.l.b16 %v1620_v35 }
 0x125   :  { %v1624_v39 = vpack.c.b16 %v440_v38, %v440_v38 }
 0x127   :  { %442 = vrot.lane.b32.xlu1 %v1624_v39, %s1519_s15 }
 0x128   :  { %155 = vrot.lane.b32.xlu0 %v112_v7, %s1518_s2  ;;  %298 = vrot.lane.b32.xlu2 %v1628_v41, %s1519_s15  ;;  %v153_v52 = vpop.permute.xlu1 %152 }
 0x129   :  { %v1649_v54 = vpack.c.bf16 %v153_v52, %v153_v52 }
 0x12b   :  { %v512_v56 = vunpack.c.l.b16 %v1649_v54 }
 0x12d   :  { %v1655_v57 = vpack.c.b16 %v512_v56, %v512_v56 }
 0x130   :  { %346 = vrot.lane.b32.xlu0 %v345_v48, %s1519_s15  ;;  %274 = vrot.lane.b32.xlu2 %v273_v46, %s1519_s15 }
 0x138   :  { %370 = vrot.lane.b32.xlu0 %v369_v55, %s1519_s15  ;;  %418 = vrot.lane.b32.xlu2 %v1647_v53, %s1519_s15 }
 0x140   :  { %514 = vrot.lane.b32.xlu0 %v1655_v57, %s1519_s15 }
 0x148   :  { %752 = vrot.lane.b32.xlu0 %v176_v32, %s1508_s26 }
 0x150   :  { %816 = vrot.lane.b32.xlu0 %v249_v16, %s1508_s26 }
 0x158   :  { %837 = vrot.lane.b32.xlu0 %v273_v46, %s1508_s26 }
 0x160   :  { %900 = vrot.lane.b32.xlu0 %v345_v48, %s1508_s26 }
 0x168   :  { %921 = vrot.lane.b32.xlu0 %v369_v55, %s1508_s26 }
 0x172   :  { %v227_v58 = vpop.permute.xlu2 %226 }
 0x173   :  { %v232_v59 = vsel %vm179_vm1, %v227_v58, 0 }
 0x174   :  { %241 = vmatpush.bf16.xpose.msra.mxu3 %v232_v59 }
 0x17a   :  { %v178_v60 = vpop.permute.xlu2 %177 }
 0x17b   :  { %1239 = vmatmul.msk.bf16.vlgmr.msra.gmra.mxu3 %vm179_vm1, %v160_v21  ;;  %v184_v61 = vsel %vm179_vm1, %v178_v60, 0 }
 0x17c   :  { %193 = vmatpush.bf16.xpose.msra.mxu1 %v184_v61 }
 0x181   :  { %v251_v62 = vpop.permute.xlu1 %250 }
 0x182   :  { %v203_v63 = vpop.permute.xlu0 %202  ;;  %v299_v0 = vpop.permute.xlu2 %298  ;;  %v256_v1 = vsel %vm179_vm1, %v251_v62, 0 }
 0x183   :  { %1237 = vmatmul.msk.bf16.vlgmr.msra.gmra.mxu1 %vm179_vm1, %v1601_v25  ;;  %v208_v2 = vsel %vm179_vm1, %v203_v63, 0  ;;  %265 = vmatpush.bf16.xpose.msrb.mxu0 %v256_v1  ;;  %v304_v3 = vsel %vm179_vm1, %v299_v0, 0 }
 0x184   :  { %217 = vmatpush.bf16.xpose.msra.mxu2 %v208_v2 }
 0x189   :  { %v323_v4 = vpop.permute.xlu1 %322 }
 0x18a   :  { %v150_v5 = vpop.permute.xlu0 %149  ;;  %v275_v6 = vpop.permute.xlu2 %274  ;;  %1240 = vmatmul.msk.bf16.vlgmr.msrb.gmra.mxu0 %vm179_vm1, %v1583_v9  ;;  %v328_v7 = vsel %vm179_vm1, %v323_v4, 0 }
 0x18b   :  { %v171_v8 = vpack.c.bf16 %v150_v5, %v150_v5  ;;  %1238 = vmatmul.msk.bf16.vlgmr.msra.gmra.mxu2 %vm179_vm1, %v1585_v12  ;;  %v280_v10 = vsel %vm179_vm1, %v275_v6, 0  ;;  %337 = vmatpush.bf16.xpose.msrb.mxu3 %v328_v7 }
 0x18c   :  { %313 = vmatpush.bf16.xpose.msrb.mxu2 %v304_v3  ;;  %289 = vmatpush.bf16.xpose.msrb.mxu1 %v280_v10 }
 0x18d   :  { %v488_v11 = vunpack.c.l.b16 %v171_v8 }
 0x18f   :  { %v1678_v13 = vpack.c.b16 %v488_v11, %v488_v11 }
 0x191   :  { %490 = vrot.lane.b32.xlu2 %v1678_v13, %s1519_s15  ;;  %v395_v14 = vpop.permute.xlu1 %394 }
 0x192   :  { %v400_v16 = vsel %vm179_vm1, %v395_v14, 0  ;;  %v147_v9 = vpop.permute.xlu0 %146  ;;  %v419_v18 = vpop.permute.xlu2 %418  ;;  %1243 = vmatmul.msk.bf16.vlgmr.msrb.gmra.mxu3 %vm179_vm1, %v1589_v15 }
 0x193   :  { %v1685_v19 = vpack.c.bf16 %v147_v9, %v147_v9  ;;  %v424_v12 = vsel %vm179_vm1, %v419_v18, 0  ;;  %1241 = vmatmul.msk.bf16.vlgmr.msrb.gmra.mxu1 %vm179_vm1, %v1626_v40 }
 0x194   :  { %409 = vmatpush.bf16.xpose.msra.mxu2 %v400_v16  ;;  %433 = vmatpush.bf16.xpose.msra.mxu3 %v424_v12 }
 0x195   :  { %v464_v20 = vunpack.c.l.b16 %v1685_v19 }
 0x197   :  { %v1691_v21 = vpack.c.b16 %v464_v20, %v464_v20 }
 0x199   :  { %466 = vrot.lane.b32.xlu1 %v1691_v21, %s1519_s15  ;;  %v443_v28 = vpop.permute.xlu1 %442 }
 0x19a   :  { %v156_v22 = vpop.permute.xlu0 %155  ;;  %v448_v33 = vsel %vm179_vm1, %v443_v28, 0 }
 0x19b   :  { %v173_v25 = vpack.c.bf16 %v156_v22, %v156_v22  ;;  %1242 = vmatmul.msk.bf16.vlgmr.msrb.gmra.mxu2 %vm179_vm1, %v1614_v31 }
 0x19d   :  { %v536_v15 = vunpack.c.l.b16 %v173_v25 }
 0x19f   :  { %v1697_v26 = vpack.c.b16 %v536_v15, %v536_v15 }
 0x1a1   :  { %774 = vrot.lane.b32.xlu1 %v1591_v17, %s1508_s26  ;;  %538 = vrot.lane.b32.xlu2 %v1697_v26, %s1519_s15 }
 0x1a2   :  { %v347_v29 = vpop.permute.xlu0 %346  ;;  %1247 = vmatmul.msk.bf16.vlgmr.msra.gmra.mxu3 %vm179_vm1, %v1639_v47 }
 0x1a3   :  { %v352_v32 = vsel %vm179_vm1, %v347_v29, 0 }
 0x1a4   :  { %361 = vmatpush.bf16.xpose.msra.mxu0 %v352_v32 }
 0x1a9   :  { %879 = vrot.lane.b32.xlu1 %v1597_v23, %s1508_s26  ;;  %795 = vrot.lane.b32.xlu2 %v1599_v24, %s1508_s26 }
 0x1aa   :  { %v371_v17 = vpop.permute.xlu0 %370 }
 0x1ab   :  { %v376_v31 = vsel %vm179_vm1, %v371_v17, 0  ;;  %1244 = vmatmul.msk.bf16.vlgmr.msra.gmra.mxu0 %vm179_vm1, %v1630_v42  ;;  %1246 = vmatmul.msk.bf16.vlgmr.msra.gmra.mxu2 %vm179_vm1, %v1608_v27 }
 0x1ac   :  { %457 = vmatpush.bf16.xpose.msrb.mxu0 %v448_v33  ;;  %385 = vmatpush.bf16.xpose.msra.mxu1 %v376_v31 }
 0x1b1   :  { %942 = vrot.lane.b32.xlu1 %v1612_v30, %s1508_s26  ;;  %858 = vrot.lane.b32.xlu2 %v1628_v41, %s1508_s26 }
 0x1b2   :  { %v515_v23 = vpop.permute.xlu0 %514 }
 0x1b3   :  { %v520_v34 = vsel %vm179_vm1, %v515_v23, 0  ;;  %1245 = vmatmul.msk.bf16.vlgmr.msra.gmra.mxu1 %vm179_vm1, %v1641_v49 }
 0x1b4   :  { %529 = vmatpush.bf16.xpose.msrb.mxu3 %v520_v34 }
 0x1b9   :  { %963 = vrot.lane.b32.xlu2 %v1647_v53, %s1508_s26 }
 0x1ba   :  { %v753_v24 = vpop.permute.xlu0 %752 }
 0x1bb   :  { %1248 = vmatmul.msk.bf16.vlgmr.msrb.gmra.mxu0 %vm179_vm1, %v1620_v35  ;;  %1251 = vmatmul.msk.bf16.vlgmr.msrb.gmra.mxu3 %vm179_vm1, %v1649_v54  ;;  %v759_v55 = vsel %vm757_vm2, %v753_v24, 0 }
 0x1c2   :  { %v817_v36 = vpop.permute.xlu0 %816 }
 0x1c3   :  { %v822_v41 = vsel %vm757_vm2, %v817_v36, 0 }
 0x1ca   :  { %v838_v37 = vpop.permute.xlu0 %837 }
 0x1cb   :  { %v843_v0 = vsel %vm757_vm2, %v838_v37, 0 }
 0x1d2   :  { %v901_v44 = vpop.permute.xlu0 %900 }
 0x1d3   :  { %v906_v47 = vsel %vm757_vm2, %v901_v44, 0 }
 0x1eb   :  { %v491_v27 = vpop.permute.xlu2 %490 }
 0x1ec   :  { %v496_v30 = vsel %vm179_vm1, %v491_v27, 0 }
 0x1ed   :  { %505 = vmatpush.bf16.xpose.msrb.mxu2 %v496_v30 }
 0x1f4   :  { %1250 = vmatmul.msk.bf16.vlgmr.msrb.gmra.mxu2 %vm179_vm1, %v171_v8 }
 0x1fb   :  { %v539_v38 = vpop.permute.xlu2 %538 }
 0x1fc   :  { %v544_v40 = vsel %vm179_vm1, %v539_v38, 0 }
 0x1fd   :  { %553 = vmatpush.bf16.xpose.msra.mxu0 %v544_v40  ;;  %v1799_v40 = vpop.permute.xlu0 %921 }
 0x1fe   :  { %v1733_v35 = vpop.f32.mrf.mxu3 }
 0x1ff   :  { %v566_v42 = vsel %vm559_vm3, %v1733_v35, -inf }
 0x200   :  { %567 = vmax.xlane.f32.xlu1 %v566_v42  ;;  %v1737_v43 = vpop.f32.mrf.mxu1 }
 0x201   :  { %v560_v45 = vsel %vm559_vm3, %v1737_v43, -inf }
 0x202   :  { %561 = vmax.xlane.f32.xlu2 %v560_v45 }
 0x203   :  { %v796_v46 = vpop.permute.xlu2 %795 }
 0x204   :  { %v801_v48 = vsel %vm757_vm2, %v796_v46, 0  ;;  %1252 = vmatmul.msk.bf16.vlgmr.msra.gmra.mxu0 %vm179_vm1, %v173_v25 }
 0x205   :  { %831 = vmatpush.bf16.msrb.mxu0 %v822_v41  ;;  %810 = vmatpush.bf16.msra.mxu3 %v801_v48 }
 0x206   :  { %v245_v49 = vpop.f32.mrf.mxu3 }
 0x207   :  { %v1744_v50 = vpop.f32.mrf.mxu0 }
 0x208   :  { %v197_v51 = vpop.f32.mrf.mxu1  ;;  %v569_v52 = vsel %vm559_vm3, %v1744_v50, -inf }
 0x209   :  { %915 = vmatpush.bf16.msra.mxu0 %v906_v47 }
 0x20a   :  { %570 = vmax.xlane.f32.xlu2 %v569_v52 }
 0x20b   :  { %v467_v53 = vpop.permute.xlu1 %466  ;;  %v859_v62 = vpop.permute.xlu2 %858 }
 0x20c   :  { %v472_v54 = vsel %vm179_vm1, %v467_v53, 0  ;;  %v864_v2 = vsel %vm757_vm2, %v859_v62, 0 }
 0x20d   :  { %481 = vmatpush.bf16.xpose.msrb.mxu1 %v472_v54 }
 0x20e   :  { %v1750_v56 = vpop.f32.mrf.mxu2 }
 0x20f   :  { %v269_v58 = vpop.f32.mrf.mxu0  ;;  %v563_v59 = vsel %vm559_vm3, %v1750_v56, -inf }
 0x210   :  { %564 = vmax.xlane.f32.xlu0 %v563_v59  ;;  %v1754_v60 = vpop.f32.mrf.mxu1 }
 0x211   :  { %v572_v61 = vsel %vm559_vm3, %v1754_v60, -inf }
 0x212   :  { %573 = vmax.xlane.f32.xlu2 %v572_v61 }
 0x213   :  { %v775_v63 = vpop.permute.xlu1 %774  ;;  %v1794_v27 = vpop.permute.xlu2 %963 }
 0x214   :  { %v780_v1 = vsel %vm757_vm2, %v775_v63, 0  ;;  %1249 = vmatmul.msk.bf16.vlgmr.msrb.gmra.mxu1 %vm179_vm1, %v1685_v19 }
 0x215   :  { %768 = vmatpush.bf16.msra.mxu1 %v759_v55  ;;  %789 = vmatpush.bf16.msra.mxu2 %v780_v1  ;;  %v1763_v3 = vpop.f32.mrf.mxu3 }
 0x216   :  { %v221_v4 = vpop.f32.mrf.mxu2  ;;  %v578_v5 = vsel %vm559_vm3, %v1763_v3, -inf }
 0x217   :  { %579 = vmax.xlane.f32.xlu1 %v578_v5 }
 0x218   :  { %v293_v6 = vpop.f32.mrf.mxu1 }
 0x219   :  { %852 = vmatpush.bf16.msrb.mxu1 %v843_v0  ;;  %873 = vmatpush.bf16.msrb.mxu2 %v864_v2 }
 0x21b   :  { %v880_v7 = vpop.permute.xlu1 %879 }
 0x21c   :  { %v885_v8 = vsel %vm757_vm2, %v880_v7, 0 }
 0x21d   :  { %894 = vmatpush.bf16.msrb.mxu3 %v885_v8  ;;  %v341_v10 = vpop.f32.mrf.mxu3 }
 0x21e   :  { %v1768_v11 = vpop.f32.mrf.mxu2 }
 0x21f   :  { %v575_v33 = vsel %vm559_vm3, %v1768_v11, -inf }
 0x223   :  { %v1801_v41 = vpop.permute.xlu1 %942 }
 0x225   :  { %v1770_v14 = vpop.f32.mrf.mxu3 }
 0x226   :  { %v317_v16 = vpop.f32.mrf.mxu2  ;;  %v590_v8 = vsel %vm559_vm3, %v1770_v14, -inf }
 0x228   :  { %v1772_v9 = vpop.f32.mrf.mxu0 }
 0x229   :  { %v581_v18 = vsel %vm559_vm3, %v1772_v9, -inf }
 0x22a   :  { %582 = vmax.xlane.f32.xlu0 %v581_v18 }
 0x22d   :  { %v437_v19 = vpop.f32.mrf.mxu3 }
 0x22e   :  { %v1776_v12 = vpop.f32.mrf.mxu2 }
 0x22f   :  { %v587_v23 = vsel %vm559_vm3, %v1776_v12, -inf }
 0x230   :  { %v365_v20 = vpop.f32.mrf.mxu0  ;;  %v1778_v22 = vpop.f32.mrf.mxu1 }
 0x231   :  { %v584_v25 = vsel %vm559_vm3, %v1778_v22, -inf }
 0x232   :  { %585 = vmax.xlane.f32.xlu0 %v584_v25 }
 0x236   :  { %v413_v15 = vpop.f32.mrf.mxu2 }
 0x238   :  { %v389_v28 = vpop.f32.mrf.mxu1  ;;  %v1782_v29 = vpop.f32.mrf.mxu0 }
 0x239   :  { %v593_v32 = vsel %vm559_vm3, %v1782_v29, -inf }
 0x23a   :  { %594 = vmax.xlane.f32.xlu1 %v593_v32  ;;  %576 = vmax.xlane.f32.xlu0 %v575_v33 }
 0x23e   :  { %v1788_v17 = vpop.f32.mrf.mxu3 }
 0x23f   :  { %v602_v34 = vsel %vm559_vm3, %v1788_v17, -inf }
 0x240   :  { %v461_v31 = vpop.f32.mrf.mxu0 }
 0x242   :  { %588 = vmax.xlane.f32.xlu1 %v587_v23  ;;  %603 = vmax.xlane.f32.xlu0 %v602_v34 }
 0x246   :  { %v533_v24 = vpop.f32.mrf.mxu3 }
 0x273   :  { %v568_v53 = vpop.xlane.xlu1 %567 }
 0x274   :  { %v610_v59 = vsub.f32 %v1733_v35, %v568_v53 }
 0x275   :  { %v562_v30 = vpop.xlane.xlu2 %561 }
 0x276   :  { %v608_v36 = vsub.f32 %v1737_v43, %v562_v30  ;;  %v628_v0 = vmul.f32 1.442695, %v610_v59 }
 0x277   :  { %v1797_v37 = vpop.f32.mrf.mxu2 }
 0x278   :  { %v624_v38 = vmul.f32 1.442695, %v608_v36  ;;  %v599_v19 = vsel %vm559_vm3, %v1797_v37, -inf }
 0x27a   :  { %1341 = vpow2.f32 %v624_v38 }
 0x27d   :  { %v571_v42 = vpop.xlane.xlu2 %570 }
 0x27e   :  { %v611_v44 = vsub.f32 %v1744_v50, %v571_v42 }
 0x27f   :  { %v509_v45 = vpop.f32.mrf.mxu2 }
 0x280   :  { %v1804_v46 = vpop.eup %1341  ;;  %v630_v47 = vmul.f32 1.442695, %v611_v44 }
 0x281   :  { %v1806_v48 = vpop.f32.mrf.mxu0  ;;  %v656_v43 = vsel %vm559_vm3, %v1804_v46, 0.0 }
 0x282   :  { %1343 = vpow2.f32 %v630_v47  ;;  %657 = vadd.xlane.f32.xlu2 %v656_v43  ;;  %v605_v49 = vsel %vm559_vm3, %v1806_v48, -inf }
 0x283   :  { %v565_v51 = vpop.xlane.xlu0 %564  ;;  %606 = vmax.xlane.f32.xlu1 %v605_v49 }
 0x284   :  { %v609_v52 = vsub.f32 %v1750_v56, %v565_v51 }
 0x285   :  { %v574_v50 = vpop.xlane.xlu2 %573 }
 0x286   :  { %v626_v54 = vmul.f32 1.442695, %v609_v52  ;;  %v612_v55 = vsub.f32 %v1754_v60, %v574_v50 }
 0x288   :  { %v1814_v58 = vpop.eup %1343  ;;  %1345 = vpow2.f32 %v626_v54  ;;  %v632_v61 = vmul.f32 1.442695, %v612_v55 }
 0x289   :  { %v557_v62 = vpop.f32.mrf.mxu0  ;;  %v665_v63 = vsel %vm559_vm3, %v1814_v58, 0.0 }
 0x28a   :  { %1347 = vpow2.f32 %v632_v61  ;;  %666 = vadd.xlane.f32.xlu0 %v665_v63  ;;  %v580_v24 = vpop.xlane.xlu1 %579 }
 0x28b   :  { %1349 = vpow2.f32 %v628_v0  ;;  %v927_v0 = vsel %vm757_vm2, %v1799_v40, 0 }
 0x28e   :  { %v1819_v1 = vpop.eup %1345 }
 0x28f   :  { %v659_v56 = vsel %vm559_vm3, %v1819_v1, 0.0 }
 0x290   :  { %v1823_v2 = vpop.eup %1347  ;;  %660 = vadd.xlane.f32.xlu1 %v659_v56 }
 0x291   :  { %v1825_v60 = vpop.f32.mrf.mxu1  ;;  %v668_v35 = vsel %vm559_vm3, %v1823_v2, 0.0  ;;  %v1831_v5 = vpop.eup %1349 }
 0x292   :  { %669 = vadd.xlane.f32.xlu0 %v668_v35  ;;  %v596_v4 = vsel %vm559_vm3, %v1825_v60, -inf  ;;  %v662_v7 = vsel %vm559_vm3, %v1831_v5, 0.0 }
 0x293   :  { %597 = vmax.xlane.f32.xlu2 %v596_v4 }
 0x299   :  { %v485_v6 = vpop.f32.mrf.mxu1 }
 0x29a   :  { %663 = vadd.xlane.f32.xlu0 %v662_v7 }
 0x29b   :  { %591 = vmax.xlane.f32.xlu2 %v590_v8 }
 0x29d   :  { %v583_v10 = vpop.xlane.xlu0 %582 }
 0x29e   :  { %v615_v16 = vsub.f32 %v1772_v9, %v583_v10 }
 0x2a0   :  { %v638_v18 = vmul.f32 1.442695, %v615_v16 }
 0x2a2   :  { %1351 = vpow2.f32 %v638_v18 }
 0x2a3   :  { %600 = vmax.xlane.f32.xlu2 %v599_v19 }
 0x2a5   :  { %v586_v20 = vpop.xlane.xlu0 %585 }
 0x2a6   :  { %v616_v23 = vsub.f32 %v1778_v22, %v586_v20 }
 0x2a8   :  { %v1840_v25 = vpop.eup %1351  ;;  %v640_v34 = vmul.f32 1.442695, %v616_v23 }
 0x2a9   :  { %v677_v15 = vsel %vm559_vm3, %v1840_v25, 0.0 }
 0x2aa   :  { %678 = vadd.xlane.f32.xlu1 %v677_v15 }
 0x2ad   :  { %v577_v28 = vpop.xlane.xlu0 %576 }
 0x2ae   :  { %v613_v32 = vsub.f32 %v1768_v11, %v577_v28  ;;  %984 = vrot.lane.b32.xlu0 %v1624_v39, %s1508_s26  ;;  %v614_v11 = vsub.f32 %v1763_v3, %v580_v24  ;;  %v595_v39 = vpop.xlane.xlu1 %594  ;;  %v948_v28 = vsel %vm757_vm2, %v1801_v41, 0 }
 0x2af   :  { %v619_v42 = vsub.f32 %v1782_v29, %v595_v39 }
 0x2b0   :  { %v634_v9 = vmul.f32 1.442695, %v613_v32  ;;  %v636_v36 = vmul.f32 1.442695, %v614_v11 }
 0x2b1   :  { %v646_v44 = vmul.f32 1.442695, %v619_v42 }
 0x2b2   :  { %1353 = vpow2.f32 %v634_v9 }
 0x2b3   :  { %1355 = vpow2.f32 %v640_v34 }
 0x2b4   :  { %1357 = vpow2.f32 %v636_v36 }
 0x2b5   :  { %1359 = vpow2.f32 %v646_v44  ;;  %v604_v43 = vpop.xlane.xlu0 %603 }
 0x2b6   :  { %v622_v51 = vsub.f32 %v1788_v17, %v604_v43 }
 0x2b8   :  { %v1847_v33 = vpop.eup %1353  ;;  %v652_v52 = vmul.f32 1.442695, %v622_v51 }
 0x2b9   :  { %v671_v31 = vsel %vm559_vm3, %v1847_v33, 0.0  ;;  %v1855_v30 = vpop.eup %1355 }
 0x2ba   :  { %672 = vadd.xlane.f32.xlu1 %v671_v31  ;;  %v680_v38 = vsel %vm559_vm3, %v1855_v30, 0.0  ;;  %v1860_v45 = vpop.eup %1357 }
 0x2bb   :  { %1026 = vrot.lane.b32.xlu2 %v1678_v13, %s1508_s26  ;;  %v589_v13 = vpop.xlane.xlu1 %588  ;;  %v674_v3 = vsel %vm559_vm3, %v1860_v45, 0.0  ;;  %v1865_v49 = vpop.eup %1359 }
 0x2bc   :  { %v617_v22 = vsub.f32 %v1776_v12, %v589_v13  ;;  %v689_v29 = vsel %vm559_vm3, %v1865_v49, 0.0 }
 0x2be   :  { %v642_v47 = vmul.f32 1.442695, %v617_v22 }
 0x2c0   :  { %1361 = vpow2.f32 %v642_v47 }
 0x2c1   :  { %1363 = vpow2.f32 %v652_v52 }
 0x2c6   :  { %v1870_v53 = vpop.eup %1361 }
 0x2c7   :  { %v683_v12 = vsel %vm559_vm3, %v1870_v53, 0.0  ;;  %v1874_v54 = vpop.eup %1363 }
 0x2c8   :  { %v698_v17 = vsel %vm559_vm3, %v1874_v54, 0.0 }
 0x2d8   :  { %681 = vadd.xlane.f32.xlu0 %v680_v38 }
 0x2e4   :  { %675 = vadd.xlane.f32.xlu2 %v674_v3 }
 0x2ec   :  { %690 = vadd.xlane.f32.xlu2 %v689_v29 }
 0x2f4   :  { %684 = vadd.xlane.f32.xlu2 %v683_v12 }
 0x2f5   :  { %v658_v50 = vpop.xlane.xlu2 %657 }
 0x2f6   :  { %1365 = vrcp.f32 %v658_v50  ;;  %v607_v55 = vpop.xlane.xlu1 %606 }
 0x2fc   :  { %v1366_v59 = vpop.eup %1365  ;;  %699 = vadd.xlane.f32.xlu2 %v698_v17 }
 0x2fd   :  { %v720_v61 = vmul.f32 %v1366_v59, %v1804_v46  ;;  %v667_v62 = vpop.xlane.xlu0 %666 }
 0x2fe   :  { %1367 = vrcp.f32 %v667_v62 }
 0x2ff   :  { %v736_v63 = vpack.c.bf16 %v720_v61, %v720_v61 }
 0x301   :  { %1253 = vmatmul.msk.bf16.vlgmr.msra.gmra.mxu1 %vm559_vm3, %v736_v63 }
 0x302   :  { %936 = vmatpush.bf16.msra.mxu1 %v927_v0 }
 0x303   :  { %v661_v56 = vpop.xlane.xlu1 %660 }
 0x304   :  { %v1368_v35 = vpop.eup %1367  ;;  %1369 = vrcp.f32 %v661_v56 }
 0x305   :  { %v723_v4 = vmul.f32 %v1368_v35, %v1814_v58  ;;  %v670_v6 = vpop.xlane.xlu0 %669 }
 0x306   :  { %1371 = vrcp.f32 %v670_v6  ;;  %v598_v7 = vpop.xlane.xlu2 %597 }
 0x307   :  { %v739_v8 = vpack.c.bf16 %v723_v4, %v723_v4  ;;  %v620_v46 = vsub.f32 %v1825_v60, %v598_v7 }
 0x309   :  { %v648_v10 = vmul.f32 1.442695, %v620_v46  ;;  %1256 = vmatmul.msk.bf16.vlgmr.msrb.gmra.mxu0 %vm559_vm3, %v739_v8 }
 0x30a   :  { %v1370_v16 = vpop.eup %1369 }
 0x30b   :  { %v721_v40 = vmul.f32 %v1370_v16, %v1819_v1  ;;  %1373 = vpow2.f32 %v648_v10  ;;  %v623_v1 = vsub.f32 %v1806_v48, %v607_v55  ;;  %v969_v48 = vsel %vm757_vm2, %v1794_v27, 0 }
 0x30c   :  { %v1372_v18 = vpop.eup %1371 }
 0x30d   :  { %v737_v19 = vpack.c.bf16 %v721_v40, %v721_v40  ;;  %v724_v20 = vmul.f32 %v1372_v18, %v1823_v2  ;;  %v664_v15 = vpop.xlane.xlu0 %663 }
 0x30e   :  { %1375 = vrcp.f32 %v664_v15  ;;  %v592_v58 = vpop.xlane.xlu2 %591 }
 0x30f   :  { %v740_v32 = vpack.c.bf16 %v724_v20, %v724_v20  ;;  %v618_v60 = vsub.f32 %v1770_v14, %v592_v58  ;;  %1254 = vmatmul.msk.bf16.vlgmr.msra.gmra.mxu2 %vm559_vm3, %v737_v19  ;;  %v654_v14 = vmul.f32 1.442695, %v623_v1 }
 0x310   :  { %957 = vmatpush.bf16.msra.mxu2 %v948_v28 }
 0x311   :  { %v1891_v9 = vpop.eup %1373  ;;  %v644_v31 = vmul.f32 1.442695, %v618_v60  ;;  %1257 = vmatmul.msk.bf16.vlgmr.msrb.gmra.mxu1 %vm559_vm3, %v740_v32 }
 0x312   :  { %v692_v2 = vsel %vm559_vm3, %v1891_v9, 0.0 }
 0x313   :  { %1377 = vpow2.f32 %v644_v31  ;;  %693 = vadd.xlane.f32.xlu0 %v692_v2 }
 0x314   :  { %v1376_v23 = vpop.eup %1375  ;;  %1068 = vrot.lane.b32.xlu2 %v1697_v26, %s1508_s26  ;;  %1379 = vpow2.f32 %v654_v14 }
 0x315   :  { %v722_v41 = vmul.f32 %v1376_v23, %v1831_v5 }
 0x316   :  { %v601_v34 = vpop.xlane.xlu2 %600 }
 0x317   :  { %v738_v24 = vpack.c.bf16 %v722_v41, %v722_v41  ;;  %v621_v39 = vsub.f32 %v1797_v37, %v601_v34 }
 0x319   :  { %v1900_v11 = vpop.eup %1377  ;;  %1255 = vmatmul.msk.bf16.vlgmr.msra.gmra.mxu3 %vm559_vm3, %v738_v24  ;;  %v650_v26 = vmul.f32 1.442695, %v621_v39 }
 0x31a   :  { %978 = vmatpush.bf16.msra.mxu3 %v969_v48  ;;  %v686_v36 = vsel %vm559_vm3, %v1900_v11, 0.0  ;;  %v1908_v5 = vpop.eup %1379 }
 0x31b   :  { %687 = vadd.xlane.f32.xlu1 %v686_v36  ;;  %v701_v27 = vsel %vm559_vm3, %v1908_v5, 0.0 }
 0x31d   :  { %v679_v38 = vpop.xlane.xlu1 %678 }
 0x31e   :  { %1381 = vrcp.f32 %v679_v38  ;;  %v1027_v52 = vpop.permute.xlu2 %1026 }
 0x31f   :  { %1383 = vpow2.f32 %v650_v26 }
 0x320   :  { %v985_v42 = vpop.permute.xlu0 %984 }
 0x321   :  { %v990_v44 = vsel %vm757_vm2, %v985_v42, 0 }
 0x322   :  { %999 = vmatpush.bf16.msrb.mxu0 %v990_v44 }
 0x323   :  { %702 = vadd.xlane.f32.xlu1 %v701_v27 }
 0x324   :  { %v1382_v37 = vpop.eup %1381 }
 0x325   :  { %v727_v13 = vmul.f32 %v1382_v37, %v1840_v25  ;;  %v1914_v22 = vpop.eup %1383  ;;  %v1032_v25 = vsel %vm757_vm2, %v1027_v52, 0 }
 0x326   :  { %v695_v47 = vsel %vm559_vm3, %v1914_v22, 0.0 }
 0x327   :  { %v743_v3 = vpack.c.bf16 %v727_v13, %v727_v13  ;;  %1005 = vrot.lane.b32.xlu0 %v1691_v21, %s1508_s26 }
 0x329   :  { %1260 = vmatmul.msk.bf16.vlgmr.msra.gmra.mxu0 %vm559_vm3, %v743_v3 }
 0x32b   :  { %696 = vadd.xlane.f32.xlu1 %v695_v47 }
 0x32d   :  { %v673_v43 = vpop.xlane.xlu1 %672 }
 0x32e   :  { %1385 = vrcp.f32 %v673_v43 }
 0x334   :  { %v1386_v51 = vpop.eup %1385 }
 0x335   :  { %v725_v29 = vmul.f32 %v1386_v51, %v1847_v33 }
 0x337   :  { %v741_v12 = vpack.c.bf16 %v725_v29, %v725_v29 }
 0x339   :  { %1258 = vmatmul.msk.bf16.vlgmr.msrb.gmra.mxu2 %vm559_vm3, %v741_v12 }
 0x33a   :  { %1041 = vmatpush.bf16.msrb.mxu2 %v1032_v25 }
 0x344   :  { %1047 = vrot.lane.b32.xlu1 %v1655_v57, %s1508_s26 }
 0x34b   :  { %v682_v21 = vpop.xlane.xlu0 %681 }
 0x34c   :  { %1387 = vrcp.f32 %v682_v21 }
 0x352   :  { %v1388_v50 = vpop.eup %1387 }
 0x353   :  { %v728_v55 = vmul.f32 %v1388_v50, %v1855_v30 }
 0x355   :  { %v744_v17 = vpack.c.bf16 %v728_v55, %v728_v55 }
 0x357   :  { %1261 = vmatmul.msk.bf16.vlgmr.msra.gmra.mxu1 %vm559_vm3, %v744_v17  ;;  %v676_v59 = vpop.xlane.xlu2 %675 }
 0x358   :  { %1389 = vrcp.f32 %v676_v59 }
 0x35e   :  { %v1390_v33 = vpop.eup %1389 }
 0x35f   :  { %v726_v61 = vmul.f32 %v1390_v33, %v1860_v45  ;;  %v691_v62 = vpop.xlane.xlu2 %690 }
 0x360   :  { %1391 = vrcp.f32 %v691_v62 }
 0x361   :  { %v742_v63 = vpack.c.bf16 %v726_v61, %v726_v61 }
 0x363   :  { %1259 = vmatmul.msk.bf16.vlgmr.msrb.gmra.mxu3 %vm559_vm3, %v742_v63 }
 0x366   :  { %v1392_v0 = vpop.eup %1391 }
 0x367   :  { %v731_v57 = vmul.f32 %v1392_v0, %v1865_v49  ;;  %v685_v56 = vpop.xlane.xlu2 %684 }
 0x368   :  { %1393 = vrcp.f32 %v685_v56 }
 0x369   :  { %v747_v35 = vpack.c.bf16 %v731_v57, %v731_v57 }
 0x36b   :  { %1264 = vmatmul.msk.bf16.vlgmr.msrb.gmra.mxu0 %vm559_vm3, %v747_v35 }
 0x36e   :  { %v1394_v30 = vpop.eup %1393 }
 0x36f   :  { %v729_v4 = vmul.f32 %v1394_v30, %v1870_v53  ;;  %v700_v6 = vpop.xlane.xlu2 %699 }
 0x371   :  { %v745_v7 = vpack.c.bf16 %v729_v4, %v729_v4 }
 0x373   :  { %1262 = vmatmul.msk.bf16.vlgmr.msra.gmra.mxu2 %vm559_vm3, %v745_v7 }
 0x377   :  { %v1069_v45 = vpop.permute.xlu2 %1068 }
 0x378   :  { %v1074_v8 = vsel %vm757_vm2, %v1069_v45, 0  ;;  %v1282_v45 = vld [vmem:[#allocation7 + $0x8] sm:$0xff] }
 0x379   :  { %1083 = vmatpush.bf16.msra.mxu0 %v1074_v8  ;;  %v1281_v8 = vld [vmem:[#allocation7] sm:$0xff] }
 0x37e   :  { %v1935_v46 = vpop.f32.mrf.mxu1 }
 0x386   :  { %v772_v10 = vpop.f32.mrf.mxu1  ;;  %v833_v49 = vpop.f32.mrf.mxu0 }
 0x387   :  { %v694_v16 = vpop.xlane.xlu0 %693 }
 0x388   :  { %1395 = vrcp.f32 %v694_v16 }
 0x38e   :  { %v835_v40 = vpop.f32.mrf.mxu0  ;;  %v854_v18 = vpop.f32.mrf.mxu1 }
 0x38f   :  { %v688_v19 = vpop.xlane.xlu1 %687  ;;  %v1396_v53 = vpop.eup %1395 }
 0x390   :  { %1397 = vrcp.f32 %v688_v19  ;;  %v732_v60 = vmul.f32 %v1396_v53, %v1891_v9 }
 0x392   :  { %v1937_v20 = vpop.f32.mrf.mxu2  ;;  %v748_v14 = vpack.c.bf16 %v732_v60, %v732_v60 }
 0x396   :  { %v1398_v15 = vpop.eup %1397  ;;  %v856_v58 = vpop.f32.mrf.mxu1 }
 0x397   :  { %v730_v28 = vmul.f32 %v1398_v15, %v1900_v11  ;;  %v703_v32 = vpop.xlane.xlu1 %702 }
 0x398   :  { %1399 = vrcp.f32 %v703_v32 }
 0x399   :  { %v746_v1 = vpack.c.bf16 %v730_v28, %v730_v28  ;;  %v1006_v31 = vpop.permute.xlu0 %1005 }
 0x39a   :  { %v1011_v2 = vsel %vm757_vm2, %v1006_v31, 0  ;;  %v793_v23 = vpop.f32.mrf.mxu2 }
 0x39b   :  { %1263 = vmatmul.msk.bf16.vlgmr.msra.gmra.mxu3 %vm559_vm3, %v746_v1  ;;  %1020 = vmatpush.bf16.msrb.mxu1 %v1011_v2 }
 0x39c   :  { %v812_v41 = vpop.f32.mrf.mxu3 }
 0x39e   :  { %v1400_v34 = vpop.eup %1399  ;;  %1265 = vmatmul.msk.bf16.vlgmr.msrb.gmra.mxu1 %vm559_vm3, %v748_v14 }
 0x39f   :  { %v735_v24 = vmul.f32 %v1400_v34, %v1908_v5  ;;  %v697_v11 = vpop.xlane.xlu1 %696  ;;  %1194 = vmatpush.bf16.msra.mxu1 %v1282_v45 }
 0x3a0   :  { %1401 = vrcp.f32 %v697_v11 }
 0x3a1   :  { %v751_v48 = vpack.c.bf16 %v735_v24, %v735_v24  ;;  %1403 = vrcp.f32 %v700_v6 }
 0x3a3   :  { %1268 = vmatmul.msk.bf16.vlgmr.msra.gmra.mxu0 %vm559_vm3, %v751_v48  ;;  %1195 = vmatpush.bf16.msra.mxu1 %v1281_v8 }
 0x3a4   :  { %v814_v9 = vpop.f32.mrf.mxu3 }
 0x3a6   :  { %v1402_v39 = vpop.eup %1401  ;;  %v917_v36 = vpop.f32.mrf.mxu0 }
 0x3a7   :  { %v733_v26 = vmul.f32 %v1402_v39, %v1914_v22  ;;  %v1404_v44 = vpop.eup %1403 }
 0x3a8   :  { %v734_v27 = vmul.f32 %v1404_v44, %v1874_v54 }
 0x3a9   :  { %v749_v38 = vpack.c.bf16 %v733_v26, %v733_v26 }
 0x3aa   :  { %v750_v13 = vpack.c.bf16 %v734_v27, %v734_v27 }
 0x3ab   :  { %1266 = vmatmul.msk.bf16.vlgmr.msrb.gmra.mxu2 %vm559_vm3, %v749_v38 }
 0x3ae   :  { %v919_v42 = vpop.f32.mrf.mxu0 }
 0x3b6   :  { %v1048_v37 = vpop.permute.xlu1 %1047 }
 0x3b7   :  { %v1053_v5 = vsel %vm757_vm2, %v1048_v37, 0 }
 0x3b8   :  { %1062 = vmatpush.bf16.msrb.mxu3 %v1053_v5 }
 0x3bb   :  { %1267 = vmatmul.msk.bf16.vlgmr.msrb.gmra.mxu3 %vm559_vm3, %v750_v13 }
 0x3bc   :  { %v875_v3 = vpop.f32.mrf.mxu2 }
 0x3c4   :  { %v877_v47 = vpop.f32.mrf.mxu2 }
 0x3c5   :  { %v1340_v47 = vld [vmem:[%s1973_s4] ss:$0 sm:$0xff] }
 0x3d4   :  { %v938_v43 = vpop.f32.mrf.mxu1 }
 0x3dc   :  { %v940_v51 = vpop.f32.mrf.mxu1 }
 0x3e6   :  { %v896_v22 = vpop.f32.mrf.mxu3 }
 0x3e8   :  { %v1001_v29 = vpop.f32.mrf.mxu0 }
 0x3e9   :  { %v1304_v52 = vpack.i.bf16 %v1001_v29, %v833_v49 }
 0x3eb   :  { %1305 = vrot.lane.b32.xlu2 %v1304_v52, %s1520_s16 }
 0x3ee   :  { %v898_v12 = vpop.f32.mrf.mxu3 }
 0x3f0   :  { %v1003_v25 = vpop.f32.mrf.mxu0 }
 0x3f6   :  { %v959_v21 = vpop.f32.mrf.mxu2 }
 0x3f7   :  { %v1314_v62 = vpack.i.bf16 %v959_v21, %v1937_v20 }
 0x3fe   :  { %v961_v54 = vpop.f32.mrf.mxu2 }
 0x41b   :  { %v1022_v50 = vpop.f32.mrf.mxu1 }
 0x41c   :  { %v1309_v55 = vpack.i.bf16 %v1022_v50, %v854_v18 }
 0x41e   :  { %v980_v17 = vpop.f32.mrf.mxu3  ;;  %1310 = vrot.lane.b32.xlu0 %v1309_v55, %s1521_s17 }
 0x41f   :  { %v1319_v59 = vpack.i.bf16 %v980_v17, %v812_v41 }
 0x420   :  { %v1085_v33 = vpop.f32.mrf.mxu0 }
 0x421   :  { %1320 = vrot.lane.b32.xlu1 %v1319_v59, %s1522_s18  ;;  %v1334_v57 = vpack.i.bf16 %v1085_v33, %v917_v36 }
 0x423   :  { %v1024_v61 = vpop.f32.mrf.mxu1 }
 0x426   :  { %v982_v63 = vpop.f32.mrf.mxu3  ;;  %1315 = vrot.lane.b32.xlu0 %v1314_v62, %s1509_s27 }
 0x428   :  { %v1087_v0 = vpop.f32.mrf.mxu0 }
 0x42e   :  { %v1043_v56 = vpop.f32.mrf.mxu2  ;;  %1335 = vrot.lane.b32.xlu0 %v1334_v57, %s1523_s19 }
 0x42f   :  { %v1324_v35 = vpack.i.bf16 %v1043_v56, %v875_v3 }
 0x431   :  { %1325 = vrot.lane.b32.xlu1 %v1324_v35, %s1524_s20 }
 0x436   :  { %v1045_v30 = vpop.f32.mrf.mxu2 }
 0x43e   :  { %v1064_v4 = vpop.f32.mrf.mxu3 }
 0x43f   :  { %v1329_v6 = vpack.i.bf16 %v1064_v4, %v896_v22 }
 0x441   :  { %1330 = vrot.lane.b32.xlu2 %v1329_v6, %s1525_s21 }
 0x445   :  { %v1306_v18 = vpop.permute.xlu2 %1305 }
 0x446   :  { %v1066_v7 = vpop.f32.mrf.mxu3  ;;  %v1308_v60 = vunpack.i.h.bf16 %v1306_v18  ;;  %v1307_v1 = vunpack.i.l.bf16 %v1306_v18 }
 0x490   :  { %v1311_v10 = vpop.permute.xlu0 %1310 }
 0x491   :  { %v1313_v14 = vunpack.i.h.bf16 %v1311_v10  ;;  %v1312_v41 = vunpack.i.l.bf16 %v1311_v10 }
 0x493   :  { %v1321_v19 = vpop.permute.xlu1 %1320 }
 0x494   :  { %v1323_v15 = vunpack.i.h.bf16 %v1321_v19  ;;  %v1322_v58 = vunpack.i.l.bf16 %v1321_v19 }
 0x498   :  { %v1316_v49 = vpop.permute.xlu0 %1315 }
 0x499   :  { %v1318_v16 = vunpack.i.h.bf16 %v1316_v49  ;;  %v1317_v40 = vunpack.i.l.bf16 %v1316_v49 }
 0x49b   :  { %v1157_v20 = vsel %vm179_vm1, %v938_v43, %v1318_v16  ;;  %v1117_v53 = vsel %vm179_vm1, %v1935_v46, %v1317_v40  ;;  %v1331_v31 = vpop.permute.xlu2 %1330 }
 0x49c   :  { %v1158_v28 = vsel %vm559_vm3, %v1157_v20, %v1323_v15  ;;  %v1118_v32 = vsel %vm559_vm3, %v1117_v53, %v1322_v58  ;;  %v1333_v48 = vunpack.i.h.bf16 %v1331_v31  ;;  %v1332_v9 = vunpack.i.l.bf16 %v1331_v31 }
 0x49d   :  { %v1120_v2 = vsel %vm1119_vm4, %v1118_v32, %v1307_v1  ;;  %v1159_v23 = vsel %vm1119_vm4, %v1158_v28, %v1308_v60 }
 0x49e   :  { %v1122_v39 = vsel %vm1121_vm5, %v1120_v2, %v1312_v41  ;;  %v1160_v36 = vsel %vm1121_vm5, %v1159_v23, %v1313_v14 }
 0x4a0   :  { %v1336_v34 = vpop.permute.xlu0 %1335 }
 0x4a1   :  { %v1338_v26 = vunpack.i.h.bf16 %v1336_v34  ;;  %v1337_v38 = vunpack.i.l.bf16 %v1336_v34 }
 0x4a3   :  { %v1326_v24 = vpop.permute.xlu1 %1325 }
 0x4a4   :  { %v1328_v46 = vunpack.i.h.bf16 %v1326_v24  ;;  %v1327_v11 = vunpack.i.l.bf16 %v1326_v24 }
 0x4a6   :  { %v1124_v42 = vsel %vm1123_vm6, %v1122_v39, %v1327_v11  ;;  %v1161_v44 = vsel %vm1123_vm6, %v1160_v36, %v1328_v46 }
 0x4a7   :  { %v1126_v27 = vsel %vm1125_vm7, %v1124_v42, %v1332_v9  ;;  %v1162_v37 = vsel %vm1125_vm7, %v1161_v44, %v1333_v48 }
 0x4a8   :  { %v1128_v5 = vsel %vm1127_vm8, %v1126_v27, %v1337_v38  ;;  %v1163_v13 = vsel %vm1127_vm8, %v1162_v37, %v1338_v26 }
 0x4a9   :  { %v1164_v3 = vpack.c.bf16 %v1163_v13, %v1128_v5 }
 0x4ab   :  { %1277 = vmatmul.msk.bf16.vlgmr.msra.gmra.mxu1 %vm96_vm0, %v1164_v3 }
 0x528   :  { %v1197_v43 = vpop.f32.mrf.mxu1 }
 0x529   :  { %v1198_v51 = vadd.f32 %v1340_v47, %v1197_v43 }
 0x52b   :  { %1202 = vst.msk [vmem:[#allocation8] sm:$0xff] %vm96_vm0, %v1198_v51 }
 0x530   :  { %v1199_v22 = vpop.f32.mrf.mxu1 }
 0x531   :  { %v1200_v29 = vadd.f32 %v1340_v47, %v1199_v22 }
 0x533   :  { %1203 = vst.msk [vmem:[#allocation8 + $0x8] sm:$0xff] %vm96_vm0, %v1200_v29 }
 0x534   :  { %1216 = dma.vmem_to_hbm [thread:$0]  %s1209_s25, 256, %s1211_s28, [#allocation4], %s1527_s29, %s1527_s29, %s1522_s18  }
 0x535   :  { %1505 = dma.done.wait [#allocation4], 256  }
 0x536   :  { %1506 = vsyncadd [#allocation4], 4294967040 }
 0x537   :  { %1221 = vsyncpa [#allocation3], 1 }
 0x538   :  { %1222 = vsyncpa [#allocation6], 1 }
 0x539   :  { %1223 = vsyncpa [#allocation4], 1 }

</bundles_post_ra>
